<compile_context>
chip_gen: v5e
topology: v5e:2x2
jax: 0.10.0
libtpu: 0.0.40
codegen_flags: <defaults>
</compile_context>

<pallas_src>
import jax
import jax.numpy as jnp
from jax.experimental import pallas as pl
from jax.experimental.pallas import tpu as pltpu


def _fuse_kernel(w_ref, eeg_ref, fmri_ref, out_ref):
    # w_ref: SMEM f32 (2,) holding pre-normalized [w_eeg/norm, w_fmri/norm].
    a = w_ref[0]
    b = w_ref[1]
    # Convex combination; scalar normalization was hoisted out of the vector path.
    out_ref[...] = (a * eeg_ref[...] + b * fmri_ref[...]).astype(out_ref.dtype)


_LANE = 128
_TARGET_BLOCK_BYTES = 4 * 1024 * 1024   # ~4 MiB per array per block (mem-bound sweet spot)
_VMEM_LIMIT_BYTES = 48 * 1024 * 1024    # 6 x block (2 in + 1 out, double-buffered) + slack;
                                        # above v5e's 16 MiB default, under v7x's 64 MiB physical


def _choose_layout(total_elems: int, hidden: int):
    """Pick a lane-dense [rows, cols] view of the flattened tensor."""
    if total_elems % _LANE == 0:
        cols = _LANE
        for cand in (4096, 2048, 1024, 512, 256):
            if total_elems % cand == 0:
                cols = cand
                break
        return total_elems // cols, cols
    # Fallback: keep hidden as the lane dim (Pallas masks the partial lanes).
    return total_elems // hidden, hidden


def _choose_tile_rows(rows: int, cols: int, itemsize: int):
    """Byte-budgeted row tile; multiple of 8 unless the block spans the whole array."""
    tile = max(1, _TARGET_BLOCK_BYTES // (cols * itemsize))
    if tile >= rows:
        tile = rows
        # Give v7x's two TensorCores at least 2 parallel grid steps when possible.
        if rows >= 16:
            tile = ((rows + 1) // 2 + 7) // 8 * 8
    else:
        tile = max(8, (tile // 8) * 8)
    return min(tile, rows)


def eeg_fmri_weight_fuser(eeg_emb, fmri_emb, eeg_weight, fmri_weight):
    """Pallas implementation of EegFmriWeightFuser.forward.

    eeg_emb / fmri_emb: identical arbitrary shapes.
    eeg_weight / fmri_weight: scalar parameters (shape (1,) like nn.Parameter).
    """
    assert eeg_emb.shape == fmri_emb.shape
    assert eeg_emb.dtype == fmri_emb.dtype
    orig_shape = eeg_emb.shape
    hidden = orig_shape[-1]
    total = 1
    for d in orig_shape:
        total *= d

    rows, cols = _choose_layout(total, hidden)
    eeg2d = eeg_emb.reshape(rows, cols)
    fmri2d = fmri_emb.reshape(rows, cols)

    # Weights stay f32 regardless of embedding dtype (matches the f32 nn.Parameters);
    # normalization is folded into the scalars once, outside the vector path.
    w_eeg = jnp.asarray(eeg_weight, jnp.float32).reshape(())
    w_fmri = jnp.asarray(fmri_weight, jnp.float32).reshape(())
    inv_norm = 1.0 / (w_eeg + w_fmri)
    weights = jnp.stack([w_eeg * inv_norm, w_fmri * inv_norm])

    itemsize = jnp.dtype(eeg_emb.dtype).itemsize
    tile = _choose_tile_rows(rows, cols, itemsize)
    grid = (pl.cdiv(rows, tile),)

    out = pl.pallas_call(
        _fuse_kernel,
        out_shape=jax.ShapeDtypeStruct((rows, cols), eeg_emb.dtype),
        grid_spec=pltpu.PrefetchScalarGridSpec(
            num_scalar_prefetch=0,
            grid=grid,
            in_specs=[
                pl.BlockSpec(memory_space=pltpu.SMEM),           # normalized f32 weights
                pl.BlockSpec((tile, cols), lambda i: (i, 0)),    # eeg
                pl.BlockSpec((tile, cols), lambda i: (i, 0)),    # fmri
            ],
            out_specs=pl.BlockSpec((tile, cols), lambda i: (i, 0)),
        ),
        compiler_params=pltpu.CompilerParams(
            dimension_semantics=("parallel",),
            vmem_limit_bytes=_VMEM_LIMIT_BYTES,
        ),
    )(weights, eeg2d, fmri2d)

    return out.reshape(orig_shape)


if __name__ == "__main__":
    key = jax.random.PRNGKey(0)
    k1, k2, k3, k4 = jax.random.split(key, 4)

    # Small shapes consistent with "embedding" inputs: batch=2, seq=8, hidden=32
    batch, seq, hidden = 2, 8, 32
    eeg_emb = jax.random.normal(k1, (batch, seq, hidden), dtype=jnp.float32)
    fmri_emb = jax.random.normal(k2, (batch, seq, hidden), dtype=jnp.float32)

    # Matches nn.Parameter(torch.FloatTensor([1.0]))
    eeg_weight = jnp.array([1.0], dtype=jnp.float32)
    fmri_weight = jnp.array([1.0], dtype=jnp.float32)

    out = eeg_fmri_weight_fuser(eeg_emb, fmri_emb, eeg_weight, fmri_weight)
    out = jax.block_until_ready(out)

    ref = (eeg_weight[0] * eeg_emb + fmri_weight[0] * fmri_emb) / (
        eeg_weight[0] + fmri_weight[0]
    )
    assert out.shape == eeg_emb.shape
    assert jnp.allclose(out, ref, atol=1e-5, rtol=1e-5), "mismatch vs reference (demo)"

    # Second check: exercises the multi-step, ragged-last-tile, non-unit-weight path.
    eeg2 = jax.random.normal(k3, (4, 64, 200), dtype=jnp.float32)
    fmri2 = jax.random.normal(k4, (4, 64, 200), dtype=jnp.float32)
    w_e = jnp.array([0.7], dtype=jnp.float32)
    w_f = jnp.array([1.9], dtype=jnp.float32)
    out2 = jax.block_until_ready(eeg_fmri_weight_fuser(eeg2, fmri2, w_e, w_f))
    ref2 = (w_e[0] * eeg2 + w_f[0] * fmri2) / (w_e[0] + w_f[0])
    assert jnp.allclose(out2, ref2, atol=1e-5, rtol=1e-5), "mismatch vs reference (tiled)"

    print("KERNEL_OK")
</pallas_src>

<mosaic_0001>
module attributes {stable_mosaic.version = 11 : i64} {
  func.func @_fuse_kernel(%arg0: i32, %arg1: memref<2xf32, #tpu.memory_space<smem>>, %arg2: memref<1x512xf32, #tpu.memory_space<vmem>>, %arg3: memref<1x512xf32, #tpu.memory_space<vmem>>, %arg4: memref<1x512xf32, #tpu.memory_space<vmem>>) attributes {dimension_semantics = [#tpu.dimension_semantics<parallel>], iteration_bounds = array<i64: 1>, scalar_prefetch = 0 : i64, scratch_operands = 0 : i64, tpu.core_type = #tpu.core_type<tc>, window_params = [{transform_indices = @transform_0, window_bounds = array<i64: 2>}, {transform_indices = @transform_1, window_bounds = array<i64: 1, 512>}, {transform_indices = @transform_2, window_bounds = array<i64: 1, 512>}, {transform_indices = @transform_3, window_bounds = array<i64: 1, 512>}]} {
    %c0 = arith.constant 0 : index
    %0 = memref.load %arg1[%c0] : memref<2xf32, #tpu.memory_space<smem>>
    %c1 = arith.constant 1 : index
    %1 = memref.load %arg1[%c1] : memref<2xf32, #tpu.memory_space<smem>>
    %c0_0 = arith.constant 0 : index
    %c0_1 = arith.constant 0 : index
    %2 = vector.load %arg2[%c0_0, %c0_1] : memref<1x512xf32, #tpu.memory_space<vmem>>, vector<1x512xf32>
    %3 = vector.broadcast %0 : f32 to vector<1x512xf32>
    %4 = arith.mulf %3, %2 : vector<1x512xf32>
    %c0_2 = arith.constant 0 : index
    %c0_3 = arith.constant 0 : index
    %5 = vector.load %arg3[%c0_2, %c0_3] : memref<1x512xf32, #tpu.memory_space<vmem>>, vector<1x512xf32>
    %6 = vector.broadcast %1 : f32 to vector<1x512xf32>
    %7 = arith.mulf %6, %5 : vector<1x512xf32>
    %8 = arith.addf %4, %7 : vector<1x512xf32>
    %c0_4 = arith.constant 0 : index
    %c0_5 = arith.constant 0 : index
    %9 = vector.load %arg4[%c0_4, %c0_5] : memref<1x512xf32, #tpu.memory_space<vmem>>, vector<1x512xf32>
    tpu.vector_store %arg4[%c0_4, %c0_5], %8 {strides = array<i32>} : memref<1x512xf32, #tpu.memory_space<vmem>>, vector<1x512xf32>,
    return
  }
  func.func @transform_0(%arg0: i32) -> i32 {
    %c0_i32 = arith.constant 0 : i32
    %c0_i32_0 = arith.constant 0 : i32
    return %c0_i32 : i32
  }
  func.func @transform_1(%arg0: i32) -> (i32, i32) {
    %c0_i32 = arith.constant 0 : i32
    %c0_i32_0 = arith.constant 0 : i32
    return %arg0, %c0_i32 : i32, i32
  }
  func.func @transform_2(%arg0: i32) -> (i32, i32) {
    %c0_i32 = arith.constant 0 : i32
    %c0_i32_0 = arith.constant 0 : i32
    return %arg0, %c0_i32 : i32, i32
  }
  func.func @transform_3(%arg0: i32) -> (i32, i32) {
    %c0_i32 = arith.constant 0 : i32
    %c0_i32_0 = arith.constant 0 : i32
    return %arg0, %c0_i32 : i32, i32
  }
}

</mosaic_0001>

<bundles_post_ra>
// kernel: tpu_custom_call.1
= control target key start
LH: loop header
LB: loop body
LE: loop exit
PB: predicated region body
PF: predicated region fallthrough
CT: control target
= control target key end

     0   :  { %8 = vsyncpa [#allocation5], 0  ;;  %s222_s0 = inlined_call_operand.hbm [shape: f32[2], index: 0, kind: input, shape index: {}]   ;;  %s223_s1 = inlined_call_operand.hbm [shape: f32[1,512], index: 1, kind: input, shape index: {}]   ;;  %s224_s2 = inlined_call_operand.hbm [shape: f32[1,512], index: 2, kind: input, shape index: {}]   ;;  %s225_s3 = inlined_call_operand.hbm [shape: f32[1,512], index: 3, kind: output, shape index: {}]  }
   0x1   :  { %9 = vsyncpa [#allocation3], 0 }
   0x2   :  { %10 = vsyncpa [#allocation8], 0 }
   0x3   :  { %11 = vsyncpa [#allocation4], 0  ;;  %s17_s14 = sshll.u32 %s222_s0, 4  ;;  %s26_s17 = sshll.u32 %s223_s1, 4  ;;  %s18_s14 = int_to_ptr.hbm [resolvable:$true] %s17_s14  ;;  %s27_s17 = int_to_ptr.hbm [resolvable:$true] %s26_s17 }
   0x4   :  { %s186_s18 = smov [#allocation2]   ;;  %s187_s19 = smov [#allocation6]  }
   0x5   :  { %20 = dma.hbm_to_smem %s18_s14, 16, %s186_s18, [#allocation5]  }
   0x6   :  { %s28_s20 = sshll.u32 %s187_s19, 4  ;;  %s37_s23 = sshll.u32 %s224_s2, 4  ;;  %s29_s20 = int_to_ptr.vmem [resolvable:$true] %s28_s20  ;;  %s38_s23 = int_to_ptr.hbm [resolvable:$true] %s37_s23 }
   0x7   :  { %31 = dma.hbm_to_vmem [thread:$0]  %s27_s17, 64, %s29_s20, [#allocation3]  }
   0x8   :  { %s188_s24 = smov [#allocation7]  }
   0x9   :  { %s39_s25 = sshll.u32 %s188_s24, 4  ;;  %s40_s25 = int_to_ptr.vmem [resolvable:$true] %s39_s25 }
   0xa   :  { %42 = dma.hbm_to_vmem [thread:$0]  %s38_s23, 64, %s40_s25, [#allocation8]  }
   0xb   :  { %178 = dma.done.wait [#allocation5], 16  }
   0xc   :  { %179 = vsyncadd [#allocation5], 4294967280 }
   0xd   :  { %180 = dma.done.wait [#allocation3], 64  }
   0xe   :  { %181 = vsyncadd [#allocation3], 4294967232 }
   0xf   :  { %182 = dma.done.wait [#allocation8], 64  }
  0x10   :  { %183 = vsyncadd [#allocation8], 4294967232 }
  0x11   :  { %55 = sfence }
  0x12   :  { %s56_s0 = sld [smem:[#allocation2]]  ;;  %v58_v0 = vld [vmem:[#allocation6] sm:$0xf]  ;;  %v61_v1 = vld [vmem:[#allocation7] sm:$0xf]  ;;  %v65_v2 = vlaneseq  ;;  %s189_s2 = smov [#allocation9]  }
  0x13   :  { %s89_s1 = sld [smem:[#allocation2 + $0x1]]  ;;  %s75_s26 = sshll.u32 %s189_s2, 4  ;;  %s76_s26 = int_to_ptr.vmem [resolvable:$true] %s75_s26 }
  0x14   :  { %s77_s29 = sshll.u32 %s225_s3, 4  ;;  %vm67_vm0 = vcmp.lt.s32.totalorder %v65_v2, 512  ;;  %s78_s29 = int_to_ptr.hbm [resolvable:$true] %s77_s29 }
  0x18   :  { %v59_v3 = vstv %s56_s0 }
  0x19   :  { %v60_v4 = vmul.f32 %v59_v3, %v58_v0  ;;  %v62_v5 = vstv %s89_s1 }
  0x1a   :  { %v63_v6 = vmul.f32 %v62_v5, %v61_v1 }
  0x1c   :  { %v64_v7 = vadd.f32 %v63_v6, %v60_v4 }
  0x1e   :  { %69 = vst.msk [vmem:[#allocation9] sm:$0xf] %vm67_vm0, %v64_v7 }
  0x1f   :  { %80 = dma.vmem_to_hbm [thread:$0]  %s76_s26, 64, %s78_s29, [#allocation4]  }
  0x20   :  { %184 = dma.done.wait [#allocation4], 64  }
  0x21   :  { %185 = vsyncadd [#allocation4], 4294967232 }
  0x22   :  { %85 = vsyncpa [#allocation3], 1 }
  0x23   :  { %86 = vsyncpa [#allocation8], 1 }
  0x24   :  { %87 = vsyncpa [#allocation4], 1 }
  0x25   :  { %88 = vsyncpa [#allocation5], 1 }

</bundles_post_ra>
